<compile_context>
chip_gen: v7x
topology: tpu7x:2x2x1
jax: 0.10.0
libtpu: 0.0.40
codegen_flags: <defaults>
</compile_context>

<pallas_src>
import math

import jax
import jax.numpy as jnp
import numpy as np
from jax import lax
from jax.experimental import pallas as pl
from jax.experimental.pallas import tpu as pltpu

# ---------------- model config (small, consistent with the module) -------------
BATCH = 2
SEQ = 8
HIDDEN = 32
NUM_HEADS = 4
HEAD_SIZE = HIDDEN // NUM_HEADS
NEG_INF = -10000.0


# ------------------------------- kernel ---------------------------------------
def uni_attention_kernel(x_ref, w_ref, b_ref, o_ref):
    """x_ref/o_ref: (B*N, H). w_ref: (4, H, H) = [wq, wk, wv, wo] (in, out)
    layout. b_ref: (4, H) = [bq, bk, bv, bo]."""
    x = x_ref[...]                                                   # (B*N, H)

    scale = 1.0 / math.sqrt(HEAD_SIZE)
    # Three projections, each output born at lane offset 0 (no lane slices).
    q = (jnp.dot(x, w_ref[0], preferred_element_type=jnp.float32)
         + b_ref[0:1, :]) * scale                                    # fold 1/sqrt(d) once
    k = jnp.dot(x, w_ref[1], preferred_element_type=jnp.float32) + b_ref[1:2, :]
    v = jnp.dot(x, w_ref[2], preferred_element_type=jnp.float32) + b_ref[2:3, :]

    # (B*N, H) -> (B*NH, N, HD): head-major, full (8, 8) trailing tiles.
    def split_heads(t):
        t4 = jnp.transpose(t.reshape(BATCH, SEQ, NUM_HEADS, HEAD_SIZE),
                           (0, 2, 1, 3))                             # (B, NH, N, HD)
        return t4.reshape(BATCH * NUM_HEADS, SEQ, HEAD_SIZE)         # (B*NH, N, HD)

    qh, kh, vh = split_heads(q), split_heads(k), split_heads(v)

    # Causal mask built once as (SEQ, SEQ); broadcast over batch*head.
    q_idx = lax.broadcasted_iota(jnp.int32, (SEQ, SEQ), 0)
    k_idx = lax.broadcasted_iota(jnp.int32, (SEQ, SEQ), 1)
    future = q_idx < k_idx

    # One batched contraction pair over batch AND head.
    s = jnp.einsum("gqd,gkd->gqk", qh, kh,
                   preferred_element_type=jnp.float32)               # (B*NH, N, N)
    s = jnp.where(future, NEG_INF, s)
    s = s - jnp.max(s, axis=-1, keepdims=True)
    e = jnp.exp(s)
    p = e * pl.reciprocal(jnp.sum(e, axis=-1, keepdims=True), approx=False)
    cv = jnp.einsum("gqk,gkd->gqd", p, vh,
                    preferred_element_type=jnp.float32)              # (B*NH, N, HD)

    # (B*NH, N, HD) -> (B*N, H)
    combined = jnp.transpose(cv.reshape(BATCH, NUM_HEADS, SEQ, HEAD_SIZE),
                             (0, 2, 1, 3)).reshape(BATCH * SEQ, HIDDEN)

    out = (jnp.dot(combined, w_ref[3], preferred_element_type=jnp.float32)
           + b_ref[3:4, :])                                          # (B*N, H)
    o_ref[...] = out.astype(o_ref.dtype)                             # single fused store


# ------------------------------- wrapper ---------------------------------------
def uni_attention(x, params):
    B, N, H = x.shape

    # Pack params: 3 DMA'd inputs (x, weights, biases) instead of 5.
    wqkv = params["wqkv"]                                            # (H, 3H)
    w = jnp.stack([wqkv[:, :H], wqkv[:, H:2 * H], wqkv[:, 2 * H:],
                   params["wo"]], axis=0)                            # (4, H, H)
    b = jnp.concatenate([params["bqkv"].reshape(3, H),
                         params["bo"].reshape(1, H)], axis=0)        # (4, H)

    vmem = pl.BlockSpec(memory_space=pltpu.MemorySpace.VMEM)
    out = pl.pallas_call(
        uni_attention_kernel,
        out_shape=jax.ShapeDtypeStruct((B * N, H), x.dtype),
        in_specs=[vmem, vmem, vmem],
        out_specs=vmem,
    )(x.reshape(B * N, H), w, b)

    return out.reshape(B, N, H)


# ------------------------------ reference --------------------------------------
def uni_attention_ref(x, p):
    B, N, H = x.shape
    qkv = x @ p["wqkv"] + p["bqkv"][0]
    q, k, v = qkv[..., :H], qkv[..., H:2 * H], qkv[..., 2 * H:]

    def to_heads(t):
        return t.reshape(B, N, NUM_HEADS, HEAD_SIZE).transpose(0, 2, 1, 3)

    q, k, v = to_heads(q), to_heads(k), to_heads(v)
    s = jnp.einsum("bhql,bhkl->bhqk", q, k) / math.sqrt(HEAD_SIZE)
    mask = jnp.arange(N)[:, None] < jnp.arange(N)[None, :]
    s = jnp.where(mask, NEG_INF, s)
    probs = jax.nn.softmax(s, axis=-1)
    cv = jnp.einsum("bhqk,bhkl->bhql", probs, v)
    cv = cv.transpose(0, 2, 1, 3).reshape(B, N, H)
    return cv @ p["wo"] + p["bo"][0]


# ------------------------------ param init -------------------------------------
def init_params(key):
    H = HIDDEN
    ks = jax.random.split(key, 4)
    f32 = jnp.float32
    return {
        "wqkv": 0.02 * jax.random.normal(ks[0], (H, 3 * H), f32),
        "bqkv": 0.02 * jax.random.normal(ks[1], (1, 3 * H), f32),
        "wo": 0.02 * jax.random.normal(ks[2], (H, H), f32),
        "bo": 0.02 * jax.random.normal(ks[3], (1, H), f32),
    }


if __name__ == "__main__":
    key = jax.random.PRNGKey(0)
    k_x, k_p = jax.random.split(key)
    x = jax.random.normal(k_x, (BATCH, SEQ, HIDDEN), jnp.float32)
    params = init_params(k_p)

    out = uni_attention(x, params)
    out = jax.block_until_ready(out)

    ref = uni_attention_ref(x, params)
    np.testing.assert_allclose(np.asarray(out), np.asarray(ref), rtol=1e-5, atol=1e-5)
    print("KERNEL_OK")
</pallas_src>

<mosaic_0001>
module attributes {stable_mosaic.version = 11 : i64} {
  func.func @uni_attention_kernel(%arg0: memref<16x32xf32, #tpu.memory_space<vmem>>, %arg1: memref<4x32x32xf32, #tpu.memory_space<vmem>>, %arg2: memref<4x32xf32, #tpu.memory_space<vmem>>, %arg3: memref<16x32xf32, #tpu.memory_space<vmem>>) attributes {dimension_semantics = [], scalar_prefetch = 0 : i64, scratch_operands = 0 : i64, tpu.core_type = #tpu.core_type<tc>} {
    %c0 = arith.constant 0 : index
    %c0_0 = arith.constant 0 : index
    %0 = vector.load %arg0[%c0, %c0_0] : memref<16x32xf32, #tpu.memory_space<vmem>>, vector<16x32xf32>
    %c0_1 = arith.constant 0 : index
    %c0_2 = arith.constant 0 : index
    %c0_3 = arith.constant 0 : index
    %1 = vector.load %arg1[%c0_1, %c0_2, %c0_3] : memref<4x32x32xf32, #tpu.memory_space<vmem>>, vector<1x32x32xf32>
    %2 = vector.shape_cast %1 : vector<1x32x32xf32> to vector<32x32xf32>
    %cst = arith.constant dense<0.000000e+00> : vector<16x32xf32>
    %3 = tpu.matmul %0, %2, %cst {dimension_numbers = #tpu.dot_dimension_numbers<[1], [0], [0], [1], [0, 0, 1, 1], [], []>} : vector<16x32xf32>, vector<32x32xf32>, vector<16x32xf32> -> vector<16x32xf32>
    %c0_4 = arith.constant 0 : index
    %c0_5 = arith.constant 0 : index
    %4 = vector.load %arg2[%c0_4, %c0_5] : memref<4x32xf32, #tpu.memory_space<vmem>>, vector<1x32xf32>
    %5 = vector.broadcast %4 : vector<1x32xf32> to vector<16x32xf32>
    %6 = arith.addf %3, %5 : vector<16x32xf32>
    %cst_6 = arith.constant 0.353553385 : f32
    %7 = vector.broadcast %cst_6 : f32 to vector<16x32xf32>
    %8 = arith.mulf %6, %7 : vector<16x32xf32>
    %c1 = arith.constant 1 : index
    %c0_7 = arith.constant 0 : index
    %c0_8 = arith.constant 0 : index
    %9 = vector.load %arg1[%c1, %c0_7, %c0_8] : memref<4x32x32xf32, #tpu.memory_space<vmem>>, vector<1x32x32xf32>
    %10 = vector.shape_cast %9 : vector<1x32x32xf32> to vector<32x32xf32>
    %cst_9 = arith.constant dense<0.000000e+00> : vector<16x32xf32>
    %11 = tpu.matmul %0, %10, %cst_9 {dimension_numbers = #tpu.dot_dimension_numbers<[1], [0], [0], [1], [0, 0, 1, 1], [], []>} : vector<16x32xf32>, vector<32x32xf32>, vector<16x32xf32> -> vector<16x32xf32>
    %c1_10 = arith.constant 1 : index
    %c0_11 = arith.constant 0 : index
    %12 = vector.load %arg2[%c1_10, %c0_11] : memref<4x32xf32, #tpu.memory_space<vmem>>, vector<1x32xf32>
    %13 = vector.broadcast %12 : vector<1x32xf32> to vector<16x32xf32>
    %14 = arith.addf %11, %13 : vector<16x32xf32>
    %c2 = arith.constant 2 : index
    %c0_12 = arith.constant 0 : index
    %c0_13 = arith.constant 0 : index
    %15 = vector.load %arg1[%c2, %c0_12, %c0_13] : memref<4x32x32xf32, #tpu.memory_space<vmem>>, vector<1x32x32xf32>
    %16 = vector.shape_cast %15 : vector<1x32x32xf32> to vector<32x32xf32>
    %cst_14 = arith.constant dense<0.000000e+00> : vector<16x32xf32>
    %17 = tpu.matmul %0, %16, %cst_14 {dimension_numbers = #tpu.dot_dimension_numbers<[1], [0], [0], [1], [0, 0, 1, 1], [], []>} : vector<16x32xf32>, vector<32x32xf32>, vector<16x32xf32> -> vector<16x32xf32>
    %c2_15 = arith.constant 2 : index
    %c0_16 = arith.constant 0 : index
    %18 = vector.load %arg2[%c2_15, %c0_16] : memref<4x32xf32, #tpu.memory_space<vmem>>, vector<1x32xf32>
    %19 = vector.broadcast %18 : vector<1x32xf32> to vector<16x32xf32>
    %20 = arith.addf %17, %19 : vector<16x32xf32>
    %21 = vector.shape_cast %8 : vector<16x32xf32> to vector<2x8x4x8xf32>
    %22 = tpu.transpose %21, [0, 2, 1, 3] : vector<2x8x4x8xf32> -> vector<2x4x8x8xf32>
    %23 = vector.shape_cast %22 : vector<2x4x8x8xf32> to vector<8x8x8xf32>
    %24 = vector.shape_cast %14 : vector<16x32xf32> to vector<2x8x4x8xf32>
    %25 = tpu.transpose %24, [0, 2, 1, 3] : vector<2x8x4x8xf32> -> vector<2x4x8x8xf32>
    %26 = vector.shape_cast %25 : vector<2x4x8x8xf32> to vector<8x8x8xf32>
    %27 = vector.shape_cast %20 : vector<16x32xf32> to vector<2x8x4x8xf32>
    %28 = tpu.transpose %27, [0, 2, 1, 3] : vector<2x8x4x8xf32> -> vector<2x4x8x8xf32>
    %29 = vector.shape_cast %28 : vector<2x4x8x8xf32> to vector<8x8x8xf32>
    %30 = tpu.iota {dimensions = array<i32: 0>} : vector<8x8xi32>
    %31 = tpu.iota {dimensions = array<i32: 1>} : vector<8x8xi32>
    %32 = arith.cmpi slt, %30, %31 : vector<8x8xi32>
    "tpu.trace_start"() <{level = 10 : i32, message = "gqd,gkd->gqk"}> : () -> ()
    %cst_17 = arith.constant dense<0.000000e+00> : vector<8x8x8xf32>
    %33 = tpu.matmul %23, %26, %cst_17 {dimension_numbers = #tpu.dot_dimension_numbers<[2], [2], [1], [1], [0, 0, 0, 1, 1, 1], [0], [0]>} : vector<8x8x8xf32>, vector<8x8x8xf32>, vector<8x8x8xf32> -> vector<8x8x8xf32>
    %cst_18 = arith.constant -1.000000e+04 : f32
    "tpu.trace_stop"() : () -> ()
    %34 = vector.shape_cast %32 : vector<8x8xi1> to vector<1x8x8xi1>
    %35 = vector.broadcast %34 : vector<1x8x8xi1> to vector<8x8x8xi1>
    %36 = vector.broadcast %cst_18 : f32 to vector<8x8x8xf32>
    %37 = arith.select %35, %36, %33 : vector<8x8x8xi1>, vector<8x8x8xf32>
    %cst_19 = arith.constant dense<0xFF800000> : vector<8x8xf32>
    %38 = vector.multi_reduction <maximumf>, %37, %cst_19 [2] : vector<8x8x8xf32> to vector<8x8xf32>
    %39 = vector.shape_cast %38 : vector<8x8xf32> to vector<8x8x1xf32>
    %40 = vector.broadcast %39 : vector<8x8x1xf32> to vector<8x8x8xf32>
    %41 = arith.subf %37, %40 : vector<8x8x8xf32>
    %42 = math.exp %41 : vector<8x8x8xf32>
    %cst_20 = arith.constant dense<0.000000e+00> : vector<8x8xf32>
    %43 = vector.multi_reduction <add>, %42, %cst_20 [2] : vector<8x8x8xf32> to vector<8x8xf32>
    %44 = vector.shape_cast %43 : vector<8x8xf32> to vector<8x8x1xf32>
    %45 = tpu.reciprocal %44 : vector<8x8x1xf32> -> vector<8x8x1xf32>
    %46 = vector.broadcast %45 : vector<8x8x1xf32> to vector<8x8x8xf32>
    %47 = arith.mulf %42, %46 : vector<8x8x8xf32>
    "tpu.trace_start"() <{level = 10 : i32, message = "gqk,gkd->gqd"}> : () -> ()
    %cst_21 = arith.constant dense<0.000000e+00> : vector<8x8x8xf32>
    %48 = tpu.matmul %47, %29, %cst_21 {dimension_numbers = #tpu.dot_dimension_numbers<[2], [1], [1], [2], [0, 0, 0, 1, 1, 2], [0], [0]>} : vector<8x8x8xf32>, vector<8x8x8xf32>, vector<8x8x8xf32> -> vector<8x8x8xf32>
    "tpu.trace_stop"() : () -> ()
    %49 = vector.shape_cast %48 : vector<8x8x8xf32> to vector<2x4x8x8xf32>
    %50 = tpu.transpose %49, [0, 2, 1, 3] : vector<2x4x8x8xf32> -> vector<2x8x4x8xf32>
    %51 = vector.shape_cast %50 : vector<2x8x4x8xf32> to vector<16x32xf32>
    %c3 = arith.constant 3 : index
    %c0_22 = arith.constant 0 : index
    %c0_23 = arith.constant 0 : index
    %52 = vector.load %arg1[%c3, %c0_22, %c0_23] : memref<4x32x32xf32, #tpu.memory_space<vmem>>, vector<1x32x32xf32>
    %53 = vector.shape_cast %52 : vector<1x32x32xf32> to vector<32x32xf32>
    %cst_24 = arith.constant dense<0.000000e+00> : vector<16x32xf32>
    %54 = tpu.matmul %51, %53, %cst_24 {dimension_numbers = #tpu.dot_dimension_numbers<[1], [0], [0], [1], [0, 0, 1, 1], [], []>} : vector<16x32xf32>, vector<32x32xf32>, vector<16x32xf32> -> vector<16x32xf32>
    %c3_25 = arith.constant 3 : index
    %c0_26 = arith.constant 0 : index
    %55 = vector.load %arg2[%c3_25, %c0_26] : memref<4x32xf32, #tpu.memory_space<vmem>>, vector<1x32xf32>
    %56 = vector.broadcast %55 : vector<1x32xf32> to vector<16x32xf32>
    %57 = arith.addf %54, %56 : vector<16x32xf32>
    %c0_27 = arith.constant 0 : index
    %c0_28 = arith.constant 0 : index
    %58 = vector.load %arg3[%c0_27, %c0_28] : memref<16x32xf32, #tpu.memory_space<vmem>>, vector<16x32xf32>
    tpu.vector_store %arg3[%c0_27, %c0_28], %57 {strides = array<i32>} : memref<16x32xf32, #tpu.memory_space<vmem>>, vector<16x32xf32>,
    return
  }
}

</mosaic_0001>

<bundles_post_ra>
// kernel: tpu_custom_call.1
= control target key start
LH: loop header
LB: loop body
LE: loop exit
PB: predicated region body
PF: predicated region fallthrough
CT: control target
= control target key end

     0   :  { %8 = vsyncpa [#allocation3], 0  ;;  %s3761_s0 = inlined_call_operand.hbm [shape: f32[16,32], index: 0, kind: input, shape index: {}]   ;;  %s3762_s1 = inlined_call_operand.hbm [shape: f32[4,32,32], index: 1, kind: input, shape index: {}]   ;;  %s3763_s2 = inlined_call_operand.vmem [shape: f32[4,32], index: 2, kind: input, shape index: {}]   ;;  %s3764_s3 = inlined_call_operand.hbm [shape: f32[16,32], index: 3, kind: output, shape index: {}]  }
   0x1   :  { %9 = vsyncpa [#allocation6], 0 }
   0x2   :  { %10 = vsyncpa [#allocation4], 0  ;;  %s3277_s12 = smov [#allocation2]   ;;  %s3205_s16 = scalar_lea.hbm %s3761_s0, 256 }
   0x3   :  { %s16_s13 = sshll.u32 %s3277_s12, 4  ;;  %p3206_p0 = scmp.ne.s32.totalorder %s3761_s0, %s3205_s16  ;;  %s17_s13 = int_to_ptr.vmem [resolvable:$true] %s16_s13 }
   0x4   :  { %p3209_p1 = scmp.lt.u32.totalorder %s3205_s16, %s3761_s0 }
   0x6   :  { %p3211_p2 = pnand %p3209_p1, %p3206_p0 }
   0x8   :  { %3214 = shalt.err (!%p3211_p2)
}
   0x9   :  { %s3215_s21 = scalar_lea.vmem %s17_s13, 256  ;;  %p3220_p4 = scmp.lt.s32.totalorder %s17_s13, %s17_s13 }
   0xa   :  { %p3216_p3 = scmp.ne.s32.totalorder %s17_s13, %s3215_s21  ;;  %p3221_p5 = scmp.lt.s32.totalorder %s3215_s21, %s3215_s21 }
   0xc   :  { %p3222_p6 = por %p3221_p5, %p3220_p4 }
   0xe   :  { %p3223_p7 = pnand %p3222_p6, %p3216_p3 }
  0x10   :  { %3226 = shalt.err (!%p3223_p7)
}
  0x11   :  { %s3278_s22 = smov 128   ;;  %s3279_s23 = smov 8  }
  0x12   :  { %22 = dma.hbm_to_vmem [thread:$0]  %s3761_s0, 256, %s17_s13, [#allocation3], %s3278_s22, %s3278_s22, %s3279_s23  }
  0x13   :  { %s3280_s26 = smov [#allocation5]   ;;  %s3227_s30 = scalar_lea.hbm %s3762_s1, 2048 }
  0x14   :  { %s28_s27 = sshll.u32 %s3280_s26, 4  ;;  %p3228_p8 = scmp.ne.s32.totalorder %s3762_s1, %s3227_s30  ;;  %s29_s27 = int_to_ptr.vmem [resolvable:$true] %s28_s27 }
  0x15   :  { %p3231_p9 = scmp.lt.u32.totalorder %s3227_s30, %s3762_s1 }
  0x17   :  { %p3233_p10 = pnand %p3231_p9, %p3228_p8 }
  0x19   :  { %3236 = shalt.err (!%p3233_p10)
}
  0x1a   :  { %s3237_s8 = scalar_lea.vmem %s29_s27, 2048  ;;  %p3242_p12 = scmp.lt.s32.totalorder %s29_s27, %s29_s27 }
  0x1b   :  { %p3238_p11 = scmp.ne.s32.totalorder %s29_s27, %s3237_s8  ;;  %p3243_p13 = scmp.lt.s32.totalorder %s3237_s8, %s3237_s8 }
  0x1d   :  { %p3244_p0 = por %p3243_p13, %p3242_p12 }
  0x1f   :  { %p3245_p1 = pnand %p3244_p0, %p3238_p11 }
  0x21   :  { %3248 = shalt.err (!%p3245_p1)
}
  0x22   :  { %34 = dma.hbm_to_vmem [thread:$0]  %s3762_s1, 2048, %s29_s27, [#allocation6], %s3278_s22, %s3278_s22, %s3279_s23  }
  0x23   :  { %3271 = dma.done.wait [#allocation3], 256  }
  0x24   :  { %3272 = vsyncadd [#allocation3], 4294967040 }
  0x25   :  { %3273 = dma.done.wait [#allocation6], 2048  }
  0x26   :  { %3274 = vsyncadd [#allocation6], 4294965248  ;;  %v139_v0 = vld [vmem:[#allocation5 + $0x20] sm:$0xff]  ;;  %v140_v1 = vld [vmem:[#allocation5 + $0x28] sm:$0xff]  ;;  %vm54_vm0 = vcmask 261120   ;;  %s3281_s13 = smov 104   ;;  %v333_v33 = vlaneseq }
  0x27   :  { %v45_v2 = vld [vmem:[#allocation5] sm:$0xff]  ;;  %v3135_v3 = vpack.c.bf16 %v140_v1, %v139_v0  ;;  %v46_v4 = vld [vmem:[#allocation5 + $0x8] sm:$0xff]  ;;  %v141_v5 = vld [vmem:[#allocation5 + $0x30] sm:$0xff]  ;;  %s3282_s14 = smov 120   ;;  %s3283_s15 = smov 112   ;;  %v3284_v32 = vmov 0.0  }
  0x28   :  { %v142_v6 = vld [vmem:[#allocation5 + $0x38] sm:$0xff]  ;;  %v3127_v7 = vpack.c.bf16 %v46_v4, %v45_v2  ;;  %v47_v9 = vld [vmem:[#allocation5 + $0x10] sm:$0xff]  ;;  %v224_v14 = vld [vmem:[#allocation5 + $0x40] sm:$0xff]  ;;  %vm3285_vm1 = vmmov 0   ;;  %v334_v34 = vshrl.u32 %v333_v33, 7  ;;  %v1187_v35 = vand.u32 127, %v333_v33 }
  0x29   :  { %v3139_v8 = vpack.c.bf16 %v142_v6, %v141_v5  ;;  %v48_v10 = vld [vmem:[#allocation5 + $0x18] sm:$0xff]  ;;  %v43_v11 = vld [vmem:[#allocation2] sm:$0xff]  ;;  %3136 = vmatprep.subr.bf16.mxu1 %v3135_v3  ;;  %v225_v15 = vld [vmem:[#allocation5 + $0x48] sm:$0xff]  ;;  %v3286_v37 = vmov 1983009808   ;;  %vm1189_vm3 = vcmask 64512  }
  0x2a   :  { %v3131_v12 = vpack.c.bf16 %v48_v10, %v47_v9  ;;  %3022 = vmatprep.mubr.msk.f32.mxu1 %vm54_vm0, %v43_v11  ;;  %3128 = vmatprep.subr.bf16.mxu0 %v3127_v7  ;;  %v44_v13 = vld [vmem:[#allocation2 + $0x8] sm:$0xff]  ;;  %v226_v16 = vld [vmem:[#allocation5 + $0x50] sm:$0xff]  ;;  %v3143_v17 = vpack.c.bf16 %v225_v15, %v224_v14  ;;  %vm3386_vm2 = vcmp.lt.s32.totalorder %v334_v34, %v1187_v35  ;;  %v331_v38 = vunpack.c.l.s4 %v3286_v37  ;;  %s3288_s18 = smov 16   ;;  %s3289_s19 = smov 24  }
  0x2b   :  { %3138 = vmatpush3.bf16.msra.mxu1 %v3135_v3  ;;  %3130 = vmatpush3.bf16.msra.mxu0 %v3127_v7  ;;  %v227_v18 = vld [vmem:[#allocation5 + $0x58] sm:$0xff]  ;;  %v2898_v20 = vld [vmem:[%s3763_s2 + $0x1] ss:$0 sm:$0xff]  ;;  %v2895_v22 = vld [vmem:[%s3763_s2] ss:$0 sm:$0xff]  ;;  %vm2778_vm4 = vcmask 130048  }
  0x2c   :  { %3140 = vmatprep.subr.bf16.mxu1 %v3139_v8  ;;  %3132 = vmatprep.subr.bf16.mxu0 %v3131_v12  ;;  %v3147_v19 = vpack.c.bf16 %v227_v18, %v226_v16  ;;  %v3287_v39 = vmov 1934713408   ;;  %v332_v41 = vunpack.c.0.s8 %v331_v38  ;;  %v2901_v42 = vld [vmem:[%s3763_s2 + $0x2] ss:$0 sm:$0xff]  ;;  %vm2781_vm5 = vcmask 195584   ;;  %s3290_s24 = smov [#allocation7]  }
  0x2d   :  { %3011 = vmatprep.mubr.msk.f32.mxu0 %vm54_vm0, %v43_v11  ;;  %v363_v40 = vunpack.c.l.s4 %v3287_v39  ;;  %s2882_s25 = sshll.u32 %s3290_s24, 4  ;;  %s2883_s25 = int_to_ptr.vmem [resolvable:$true] %s2882_s25 }
  0x2e   :  { %v3395_v49 = vsub.s32 %v332_v41, %v334_v34  ;;  %s3249_s26 = scalar_lea.vmem %s2883_s25, 256  ;;  %p3254_p3 = scmp.lt.s32.totalorder %s2883_s25, %s2883_s25 }
  0x2f   :  { %3142 = vmatpush3.bf16.msra.mxu1 %v3139_v8  ;;  %3134 = vmatpush3.bf16.msra.mxu0 %v3131_v12  ;;  %v364_v46 = vunpack.c.0.s8 %v363_v40  ;;  %p3250_p2 = scmp.ne.s32.totalorder %s2883_s25, %s3249_s26  ;;  %p3255_p4 = scmp.lt.s32.totalorder %s3249_s26, %s3249_s26 }
  0x30   :  { %3144 = vmatprep.subr.bf16.mxu0 %v3143_v17  ;;  %3036 = vmatprep.subr.mxu1 %v3284_v32 }
  0x31   :  { %v3401_v57 = vsub.s32 %v364_v46, %v334_v34  ;;  %p3256_p5 = por %p3255_p4, %p3254_p3 }
  0x32   :  { %3023 = vmatmul.mubr.msk.f32.vlgmr.msra.gmra.mrb[0].mxu1 %vm54_vm0, %v44_v13  ;;  %3012 = vmatmul.mubr.msk.f32.vlgmr.msra.gmra.mrb[0].mxu0 %vm54_vm0, %v44_v13 }
  0x33   :  { %3033 = vmatprep.mubr.msk.f32.mxu0 %vm54_vm0, %v43_v11  ;;  %3146 = vmatpush3.bf16.msra.mxu0 %v3143_v17  ;;  %p3257_p6 = pnand %p3256_p5, %p3250_p2 }
  0x34   :  { %3148 = vmatprep.subr.bf16.mxu0 %v3147_v19  ;;  %3038 = vmatprep.mubr.msk.f32.mxu1 %vm3285_vm1, %v3284_v32 }
  0x37   :  { %3150 = vmatpush3.bf16.msra.mxu0 %v3147_v19 }
  0x38   :  { %3056 = vmatprep.subr.mxu0 %v3284_v32 }
  0x3a   :  { %3034 = vmatmul.mubr.msk.f32.vlgmr.msra.gmra.mrb[2].mxu0 %vm54_vm0, %v44_v13 }
  0x3b   :  { %3058 = vmatprep.mubr.msk.f32.mxu0 %vm3285_vm1, %v3284_v32 }
 0x105   :  { %v3024_v21 = vpop.f32.mrb[0].mxu1  ;;  %v3013_v23 = vpop.f32.mrb[0].mxu0 }
 0x106   :  { %v214_v24 = vpop.f32.mrb[1].mxu1  ;;  %v127_v26 = vpop.f32.mrb[1].mxu0  ;;  %v3364_v29 = vadd.f32 %v3024_v21, %v2898_v20  ;;  %v133_v30 = vadd.f32 %v3013_v23, %v2895_v22 }
 0x107   :  { %v215_v25 = vadd.f32 %v2898_v20, %v214_v24  ;;  %v128_v27 = vadd.f32 %v2895_v22, %v127_v26 }
 0x108   :  { %v3370_v31 = vmul.f32 0.35355338, %v133_v30 }
 0x109   :  { %614 = vrot.lane.b32.xlu1 %v215_v25, %s3281_s13  ;;  %602 = vrot.lane.b32.xlu0 %v215_v25, %s3282_s14  ;;  %v3355_v28 = vmul.f32 0.35355338, %v128_v27 }
 0x10d   :  { %608 = vrot.lane.b32.xlu0 %v215_v25, %s3283_s15  ;;  %310 = vrot.lane.b32.xlu1 %v3355_v28, %s3282_s14  ;;  %v3035_v45 = vpop.f32.mrb[2].mxu0 }
 0x10e   :  { %v3393_v47 = vadd.f32 %v3035_v45, %v2901_v42  ;;  %v299_v48 = vpop.f32.mrb[3].mxu0 }
 0x10f   :  { %v3397_v52 = vadd.f32 %v2901_v42, %v299_v48 }
 0x111   :  { %316 = vrot.lane.b32.xlu0 %v3355_v28, %s3283_s15  ;;  %322 = vrot.lane.b32.xlu1 %v3355_v28, %s3281_s13 }
 0x115   :  { %604 = vrot.lane.b32.xlu0 %v3364_v29, %s3282_s14  ;;  %610 = vrot.lane.b32.xlu1 %v3364_v29, %s3283_s15 }
 0x119   :  { %616 = vrot.lane.b32.xlu0 %v3364_v29, %s3281_s13  ;;  %312 = vrot.lane.b32.xlu1 %v3370_v31, %s3282_s14 }
 0x11d   :  { %318 = vrot.lane.b32.xlu0 %v3370_v31, %s3283_s15  ;;  %324 = vrot.lane.b32.xlu1 %v3370_v31, %s3281_s13 }
 0x121   :  { %894 = vrot.lane.b32.xlu1 %v3397_v52, %s3282_s14 }
 0x17b   :  { %v615_v43 = vpop.permute.xlu1 %614  ;;  %v603_v44 = vpop.permute.xlu0 %602 }
 0x17c   :  { %v636_v50 = vcombine.low %v603_v44, %v615_v43  ;;  %v637_v51 = vcombine.high %v603_v44, %v615_v43 }
 0x17e   :  { %v644_v58 = vrot.slane %v636_v50, %v3395_v49  ;;  %v651_v59 = vrot.slane %v637_v51, %v3395_v49 }
 0x17f   :  { %v609_v53 = vpop.permute.xlu0 %608  ;;  %v311_v54 = vpop.permute.xlu1 %310 }
 0x180   :  { %v620_v55 = vcombine.low %v215_v25, %v609_v53  ;;  %v621_v56 = vcombine.high %v215_v25, %v609_v53 }
 0x182   :  { %v628_v60 = vrot.slane %v620_v55, %v3395_v49  ;;  %v635_v61 = vrot.slane %v621_v56, %v3395_v49 }
 0x183   :  { %v317_v62 = vpop.permute.xlu0 %316  ;;  %v323_v63 = vpop.permute.xlu1 %322 }
 0x184   :  { %v652_v0 = vcombine.low %v628_v60, %v644_v58  ;;  %v653_v1 = vcombine.high %v628_v60, %v644_v58  ;;  %v668_v2 = vcombine.low %v635_v61, %v651_v59  ;;  %v669_v3 = vcombine.high %v635_v61, %v651_v59 }
 0x185   :  { %v328_v4 = vcombine.low %v3355_v28, %v317_v62  ;;  %v329_v5 = vcombine.high %v3355_v28, %v317_v62  ;;  %v344_v6 = vcombine.low %v311_v54, %v323_v63  ;;  %v345_v7 = vcombine.high %v311_v54, %v323_v63 }
 0x186   :  { %v660_v8 = vrot.slane %v652_v0, %v3401_v57  ;;  %v667_v9 = vrot.slane %v653_v1, %v3401_v57  ;;  %v676_v10 = vrot.slane %v668_v2, %v3401_v57  ;;  %v683_v11 = vrot.slane %v669_v3, %v3401_v57 }
 0x187   :  { %v336_v12 = vrot.slane %v328_v4, %v3395_v49  ;;  %v343_v13 = vrot.slane %v329_v5, %v3395_v49  ;;  %v352_v14 = vrot.slane %v344_v6, %v3395_v49  ;;  %v359_v15 = vrot.slane %v345_v7, %v3395_v49  ;;  %v605_v16 = vpop.permute.xlu0 %604  ;;  %v611_v17 = vpop.permute.xlu1 %610 }
 0x188   :  { %v756_v18 = vcombine.low %v660_v8, %v667_v9  ;;  %v2908_v19 = vcombine.high %v660_v8, %v667_v9  ;;  %v772_v20 = vcombine.low %v676_v10, %v683_v11  ;;  %v2909_v21 = vcombine.high %v676_v10, %v683_v11 }
 0x189   :  { %v360_v22 = vcombine.low %v336_v12, %v352_v14  ;;  %v361_v23 = vcombine.high %v336_v12, %v352_v14  ;;  %v376_v24 = vcombine.low %v343_v13, %v359_v15  ;;  %v377_v25 = vcombine.high %v343_v13, %v359_v15 }
 0x18a   :  { %v3422_v35 = vrot.slane %v756_v18, %v3395_v49  ;;  %v3425_v37 = vrot.slane %v2908_v19, %v3395_v49  ;;  %v3428_v38 = vrot.slane %v772_v20, %v3395_v49  ;;  %v3431_v39 = vrot.slane %v2909_v21, %v3395_v49 }
 0x18b   :  { %v368_v26 = vrot.slane %v360_v22, %v3401_v57  ;;  %v375_v27 = vrot.slane %v361_v23, %v3401_v57  ;;  %v384_v28 = vrot.slane %v376_v24, %v3401_v57  ;;  %v391_v30 = vrot.slane %v377_v25, %v3401_v57  ;;  %v617_v33 = vpop.permute.xlu0 %616  ;;  %v313_v34 = vpop.permute.xlu1 %312 }
 0x18c   :  { %v688_v44 = vcombine.low %v3364_v29, %v611_v17  ;;  %v689_v45 = vcombine.high %v3364_v29, %v611_v17  ;;  %v704_v46 = vcombine.low %v605_v16, %v617_v33  ;;  %v705_v48 = vcombine.high %v605_v16, %v617_v33 }
 0x18d   :  { %v464_v40 = vcombine.low %v368_v26, %v375_v27  ;;  %v2904_v41 = vcombine.high %v368_v26, %v375_v27  ;;  %v480_v42 = vcombine.low %v384_v28, %v391_v30  ;;  %v2905_v43 = vcombine.high %v384_v28, %v391_v30 }
 0x18e   :  { %v696_v55 = vrot.slane %v688_v44, %v3395_v49  ;;  %v703_v56 = vrot.slane %v689_v45, %v3395_v49  ;;  %v712_v29 = vrot.slane %v704_v46, %v3395_v49  ;;  %v719_v58 = vrot.slane %v705_v48, %v3395_v49 }
 0x18f   :  { %v3436_v50 = vrot.slane %v464_v40, %v3395_v49  ;;  %v3439_v51 = vrot.slane %v2904_v41, %v3395_v49  ;;  %v3442_v53 = vrot.slane %v480_v42, %v3395_v49  ;;  %v3445_v54 = vrot.slane %v2905_v43, %v3395_v49  ;;  %v319_v59 = vpop.permute.xlu0 %318  ;;  %v325_v60 = vpop.permute.xlu1 %324 }
 0x190   :  { %v788_v61 = vcombine.low %v3422_v35, %v3425_v37  ;;  %v804_v62 = vcombine.low %v3428_v38, %v3431_v39  ;;  %v720_v1 = vcombine.low %v696_v55, %v712_v29  ;;  %v721_v2 = vcombine.high %v696_v55, %v712_v29 }
 0x191   :  { %v496_v63 = vcombine.low %v3436_v50, %v3439_v51  ;;  %v512_v0 = vcombine.low %v3442_v53, %v3445_v54  ;;  %v736_v3 = vcombine.low %v703_v56, %v719_v58  ;;  %v737_v4 = vcombine.high %v703_v56, %v719_v58 }
 0x192   :  { %v396_v5 = vcombine.low %v3370_v31, %v319_v59  ;;  %v397_v6 = vcombine.high %v3370_v31, %v319_v59  ;;  %v412_v7 = vcombine.low %v313_v34, %v325_v60  ;;  %v413_v8 = vcombine.high %v313_v34, %v325_v60 }
 0x193   :  { %v728_v9 = vrot.slane %v720_v1, %v3401_v57  ;;  %v735_v10 = vrot.slane %v721_v2, %v3401_v57  ;;  %v744_v11 = vrot.slane %v736_v3, %v3401_v57  ;;  %v751_v12 = vrot.slane %v737_v4, %v3401_v57 }
 0x194   :  { %v404_v13 = vrot.slane %v396_v5, %v3395_v49  ;;  %v411_v14 = vrot.slane %v397_v6, %v3395_v49  ;;  %v420_v15 = vrot.slane %v412_v7, %v3395_v49  ;;  %v427_v16 = vrot.slane %v413_v8, %v3395_v49 }
 0x195   :  { %v824_v17 = vcombine.low %v728_v9, %v735_v10  ;;  %v2910_v31 = vcombine.high %v728_v9, %v735_v10  ;;  %v840_v18 = vcombine.low %v744_v11, %v751_v12  ;;  %v2911_v19 = vcombine.high %v744_v11, %v751_v12 }
 0x196   :  { %v428_v20 = vcombine.low %v404_v13, %v420_v15  ;;  %v429_v21 = vcombine.high %v404_v13, %v420_v15  ;;  %v444_v22 = vcombine.low %v411_v14, %v427_v16  ;;  %v445_v23 = vcombine.high %v411_v14, %v427_v16 }
 0x197   :  { %v831_v24 = vrot.slane %v824_v17, %v3395_v49  ;;  %v839_v25 = vrot.slane %v2910_v31, %v3395_v49  ;;  %v847_v26 = vrot.slane %v840_v18, %v3395_v49  ;;  %v855_v27 = vrot.slane %v2911_v19, %v3395_v49 }
 0x198   :  { %v436_v28 = vrot.slane %v428_v20, %v3401_v57  ;;  %v443_v30 = vrot.slane %v429_v21, %v3401_v57  ;;  %v452_v33 = vrot.slane %v444_v22, %v3401_v57  ;;  %v459_v34 = vrot.slane %v445_v23, %v3401_v57 }
 0x199   :  { %v856_v40 = vcombine.low %v831_v24, %v839_v25  ;;  %v872_v41 = vcombine.low %v847_v26, %v855_v27  ;;  %v796_v46 = vrot.slane %v788_v61, %v3401_v57  ;;  %v812_v48 = vrot.slane %v804_v62, %v3401_v57 }
 0x19a   :  { %v532_v42 = vcombine.low %v436_v28, %v443_v30  ;;  %v2906_v43 = vcombine.high %v436_v28, %v443_v30  ;;  %v548_v44 = vcombine.low %v452_v33, %v459_v34  ;;  %v2907_v45 = vcombine.high %v452_v33, %v459_v34 }
 0x19b   :  { %v504_v55 = vrot.slane %v496_v63, %v3401_v57  ;;  %v520_v56 = vrot.slane %v512_v0, %v3401_v57  ;;  %v789_v1 = vcombine.high %v3422_v35, %v3425_v37  ;;  %v805_v61 = vcombine.high %v3428_v38, %v3431_v39 }
 0x19c   :  { %v539_v29 = vrot.slane %v532_v42, %v3395_v49  ;;  %v547_v58 = vrot.slane %v2906_v43, %v3395_v49  ;;  %v555_v59 = vrot.slane %v548_v44, %v3395_v49  ;;  %v563_v60 = vrot.slane %v2907_v45, %v3395_v49 }
 0x19d   :  { %v820_v2 = vcombine.low %v796_v46, %v812_v48  ;;  %v528_v63 = vcombine.low %v504_v55, %v520_v56  ;;  %v497_v0 = vcombine.high %v3436_v50, %v3439_v51  ;;  %v513_v4 = vcombine.high %v3442_v53, %v3445_v54 }
 0x19e   :  { %v564_v62 = vcombine.low %v539_v29, %v547_v58  ;;  %v580_v3 = vcombine.low %v555_v59, %v563_v60  ;;  %v857_v5 = vcombine.high %v831_v24, %v839_v25  ;;  %v873_v6 = vcombine.high %v847_v26, %v855_v27 }
 0x19f   :  { %3037 = vmatpush3.xpose.msk.msra.mxu1 %vm1189_vm3, %v820_v2  ;;  %v864_v35 = vrot.slane %v856_v40, %v3401_v57  ;;  %v880_v37 = vrot.slane %v872_v41, %v3401_v57  ;;  %v821_v7 = vcombine.high %v796_v46, %v812_v48  ;;  %v803_v50 = vrot.slane %v789_v1, %v3401_v57 }
 0x1a0   :  { %3041 = vmatprep.subr.mxu1 %v3284_v32  ;;  %v572_v38 = vrot.slane %v564_v62, %v3401_v57  ;;  %v588_v39 = vrot.slane %v580_v3, %v3401_v57  ;;  %v819_v51 = vrot.slane %v805_v61, %v3401_v57  ;;  %v565_v53 = vcombine.high %v539_v29, %v547_v58 }
 0x1a1   :  { %v581_v54 = vcombine.high %v555_v59, %v563_v60  ;;  %v888_v8 = vcombine.low %v864_v35, %v880_v37  ;;  %v529_v9 = vcombine.high %v504_v55, %v520_v56  ;;  %v871_v10 = vrot.slane %v857_v5, %v3401_v57 }
 0x1a2   :  { %3039 = vmatmul.mubr.msk.f32.vlgmr.msra.gmra.mrb[2].mxu1 %vm1189_vm3, %v528_v63  ;;  %v887_v11 = vrot.slane %v873_v6, %v3401_v57  ;;  %v511_v12 = vrot.slane %v497_v0, %v3401_v57  ;;  %v527_v13 = vrot.slane %v513_v4, %v3401_v57  ;;  %v596_v14 = vcombine.low %v572_v38, %v588_v39 }
 0x1a3   :  { %3042 = vmatpush3.xpose.msk.msra.mxu1 %vm1189_vm3, %v821_v7  ;;  %3043 = vmatprep.mubr.msk.f32.mxu1 %vm3285_vm1, %v3284_v32  ;;  %v822_v15 = vcombine.low %v803_v50, %v819_v51  ;;  %v579_v16 = vrot.slane %v565_v53, %v3401_v57  ;;  %v595_v17 = vrot.slane %v581_v54, %v3401_v57 }
 0x1a4   :  { %3046 = vmatprep.subr.mxu1 %v3284_v32  ;;  %3057 = vmatpush3.xpose.msk.msra.mxu0 %vm1189_vm3, %v888_v8  ;;  %v890_v31 = vcombine.low %v871_v10, %v887_v11  ;;  %v530_v18 = vcombine.low %v511_v12, %v527_v13  ;;  %v823_v19 = vcombine.high %v803_v50, %v819_v51 }
 0x1a5   :  { %3066 = vmatprep.subr.mxu0 %v3284_v32  ;;  %v598_v20 = vcombine.low %v579_v16, %v595_v17  ;;  %v531_v21 = vcombine.high %v511_v12, %v527_v13  ;;  %v889_v22 = vcombine.high %v864_v35, %v880_v37  ;;  %v597_v23 = vcombine.high %v572_v38, %v588_v39  ;;  %v895_v38 = vpop.permute.xlu1 %894 }
 0x1a6   :  { %3044 = vmatmul.mubr.msk.f32.vlgmr.msra.gmra.mrb[4].mxu1 %vm1189_vm3, %v529_v9  ;;  %v891_v24 = vcombine.high %v871_v10, %v887_v11  ;;  %v599_v25 = vcombine.high %v579_v16, %v595_v17 }
 0x1a7   :  { %3047 = vmatpush3.xpose.msk.msra.mxu1 %vm1189_vm3, %v822_v15  ;;  %3048 = vmatprep.mubr.msk.f32.mxu1 %vm3285_vm1, %v3284_v32 }
 0x1a8   :  { %3051 = vmatprep.subr.mxu1 %v3284_v32  ;;  %3059 = vmatmul.mubr.msk.f32.vlgmr.msra.gmra.mrb[4].mxu0 %vm1189_vm3, %v596_v14 }
 0x1a9   :  { %3067 = vmatpush3.xpose.msk.msra.mxu0 %vm1189_vm3, %v890_v31  ;;  %3068 = vmatprep.mubr.msk.f32.mxu0 %vm3285_vm1, %v3284_v32 }
 0x1aa   :  { %3049 = vmatmul.mubr.msk.f32.vlgmr.msra.gmra.mrb[6].mxu1 %vm1189_vm3, %v530_v18  ;;  %3076 = vmatprep.subr.mxu0 %v3284_v32 }
 0x1ab   :  { %3052 = vmatpush3.xpose.msk.msra.mxu1 %vm1189_vm3, %v823_v19  ;;  %3053 = vmatprep.mubr.msk.f32.mxu1 %vm3285_vm1, %v3284_v32 }
 0x1ac   :  { %3061 = vmatprep.subr.mxu1 %v3284_v32  ;;  %3069 = vmatmul.mubr.msk.f32.vlgmr.msra.gmra.mrb[6].mxu0 %vm1189_vm3, %v598_v20 }
 0x1ad   :  { %3078 = vmatprep.mubr.msk.f32.mxu0 %vm3285_vm1, %v3284_v32 }
 0x1ae   :  { %3054 = vmatmul.mubr.msk.f32.vlgmr.msra.gmra.mrb[8].mxu1 %vm1189_vm3, %v531_v21 }
 0x1af   :  { %3062 = vmatpush3.xpose.msk.msra.mxu1 %vm1189_vm3, %v889_v22  ;;  %3063 = vmatprep.mubr.msk.f32.mxu1 %vm3285_vm1, %v3284_v32 }
 0x1b0   :  { %3071 = vmatprep.subr.mxu1 %v3284_v32 }
 0x1b2   :  { %3064 = vmatmul.mubr.msk.f32.vlgmr.msra.gmra.mrb[10].mxu1 %vm1189_vm3, %v597_v23 }
 0x1b3   :  { %3072 = vmatpush3.xpose.msk.msra.mxu1 %vm1189_vm3, %v891_v24  ;;  %3073 = vmatprep.mubr.msk.f32.mxu1 %vm3285_vm1, %v3284_v32 }
 0x1b4   :  { %3081 = vmatprep.subr.mxu1 %v3284_v32 }
 0x1b6   :  { %3074 = vmatmul.mubr.msk.f32.vlgmr.msra.gmra.mrb[12].mxu1 %vm1189_vm3, %v599_v25 }
 0x1b7   :  { %3083 = vmatprep.mubr.msk.f32.mxu1 %vm3285_vm1, %v3284_v32 }
 0x275   :  { %v1262_v26 = vpop.f32.mrb[2].mxu1 }
 0x276   :  { %v1800_v27 = vsel %vm3386_vm2, -10000.0, %v1262_v26  ;;  %v3040_v28 = vpop.f32.mrb[3].mxu1 }
 0x277   :  { %v1808_v30 = vsel %vm1189_vm3, %v1800_v27, -inf }
 0x278   :  { %1809 = vmax.xlane.f32.xlu0 %v1808_v30 }
 0x279   :  { %v1338_v33 = vpop.f32.mrb[4].mxu1 }
 0x27a   :  { %v1801_v34 = vsel %vm3386_vm2, -10000.0, %v1338_v33  ;;  %v3045_v40 = vpop.f32.mrb[5].mxu1 }
 0x27b   :  { %v1566_v41 = vpop.f32.mrb[4].mxu0  ;;  %v1811_v3 = vsel %vm1189_vm3, %v1801_v34, -inf }
 0x27c   :  { %v1804_v42 = vsel %vm3386_vm2, -10000.0, %v1566_v41  ;;  %v3060_v43 = vpop.f32.mrb[5].mxu0 }
 0x27d   :  { %v1414_v44 = vpop.f32.mrb[6].mxu1  ;;  %v1820_v45 = vsel %vm1189_vm3, %v1804_v42, -inf }
 0x27e   :  { %v1802_v46 = vsel %vm3386_vm2, -10000.0, %v1414_v44  ;;  %v3050_v48 = vpop.f32.mrb[7].mxu1  ;;  %1821 = vmax.xlane.f32.xlu1 %v1820_v45 }
 0x27f   :  { %v1814_v55 = vsel %vm1189_vm3, %v1802_v46, -inf  ;;  %v1718_v56 = vpop.f32.mrb[6].mxu0 }
 0x280   :  { %1815 = vmax.xlane.f32.xlu0 %v1814_v55  ;;  %v1806_v29 = vsel %vm3386_vm2, -10000.0, %v1718_v56  ;;  %v3070_v58 = vpop.f32.mrb[7].mxu0 }
 0x281   :  { %v1490_v59 = vpop.f32.mrb[8].mxu1  ;;  %v1826_v60 = vsel %vm1189_vm3, %v1806_v29, -inf }
 0x282   :  { %v1803_v1 = vsel %vm3386_vm2, -10000.0, %v1490_v59  ;;  %v3055_v61 = vpop.f32.mrb[9].mxu1  ;;  %1827 = vmax.xlane.f32.xlu1 %v1826_v60 }
 0x283   :  { %v1817_v2 = vsel %vm1189_vm3, %v1803_v1, -inf }
 0x284   :  { %1818 = vmax.xlane.f32.xlu0 %v1817_v2 }
 0x285   :  { %v1642_v62 = vpop.f32.mrb[10].mxu1 }
 0x286   :  { %v1805_v63 = vsel %vm3386_vm2, -10000.0, %v1642_v62  ;;  %v3065_v0 = vpop.f32.mrb[11].mxu1  ;;  %1812 = vmax.xlane.f32.xlu1 %v1811_v3 }
 0x287   :  { %v1823_v4 = vsel %vm1189_vm3, %v1805_v63, -inf }
 0x288   :  { %1824 = vmax.xlane.f32.xlu0 %v1823_v4 }
 0x289   :  { %v1794_v5 = vpop.f32.mrb[12].mxu1 }
 0x28a   :  { %v3568_v6 = vsel %vm3386_vm2, -10000.0, %v1794_v5  ;;  %v3075_v35 = vpop.f32.mrb[13].mxu1 }
 0x28b   :  { %v1829_v37 = vsel %vm1189_vm3, %v3568_v6, -inf }
 0x28c   :  { %1830 = vmax.xlane.f32.xlu0 %v1829_v37 }
 0x297   :  { %906 = vrot.lane.b32.xlu1 %v3397_v52, %s3281_s13 }
 0x2a2   :  { %900 = vrot.lane.b32.xlu0 %v3397_v52, %s3283_s15 }
 0x305   :  { %v1810_v39 = vpop.xlane.xlu0 %1809 }
 0x306   :  { %v1832_v7 = vsub.f32 %v1800_v27, %v1810_v39 }
 0x308   :  { %v1840_v36 = vmul.f32 1.442695, %v1832_v7 }
 0x30b   :  { %v1822_v50 = vpop.xlane.xlu1 %1821 }
 0x30c   :  { %v1836_v51 = vsub.f32 %v1804_v42, %v1822_v50 }
 0x30d   :  { %v1816_v53 = vpop.xlane.xlu0 %1815 }
 0x30e   :  { %v1834_v54 = vsub.f32 %v1802_v46, %v1816_v53  ;;  %v1848_v8 = vmul.f32 1.442695, %v1836_v51 }
 0x30f   :  { %v1828_v9 = vpop.xlane.xlu1 %1827 }
 0x310   :  { %3173 = vpow2.f32 %v1848_v8  ;;  %v1838_v10 = vsub.f32 %v1806_v29, %v1828_v9  ;;  %v1844_v12 = vmul.f32 1.442695, %v1834_v54 }
 0x311   :  { %v1819_v11 = vpop.xlane.xlu0 %1818  ;;  %3175 = vpow2.f32 %v1840_v36 }
 0x312   :  { %v1835_v13 = vsub.f32 %v1803_v1, %v1819_v11  ;;  %v1852_v14 = vmul.f32 1.442695, %v1838_v10 }
 0x313   :  { %v1813_v15 = vpop.xlane.xlu1 %1812 }
 0x314   :  { %3177 = vpow2.f32 %v1852_v14  ;;  %v1833_v16 = vsub.f32 %v1801_v34, %v1813_v15  ;;  %v1846_v31 = vmul.f32 1.442695, %v1835_v13 }
 0x315   :  { %v1825_v17 = vpop.xlane.xlu0 %1824  ;;  %3179 = vpow2.f32 %v1844_v12 }
 0x316   :  { %v1837_v18 = vsub.f32 %v1805_v63, %v1825_v17  ;;  %v1842_v19 = vmul.f32 1.442695, %v1833_v16 }
 0x317   :  { %v907_v20 = vpop.permute.xlu1 %906 }
 0x318   :  { %3181 = vpow2.f32 %v1842_v19  ;;  %v1850_v21 = vmul.f32 1.442695, %v1837_v18  ;;  %v928_v24 = vcombine.low %v895_v38, %v907_v20  ;;  %v929_v25 = vcombine.high %v895_v38, %v907_v20 }
 0x319   :  { %v3576_v22 = vpop.xlane.xlu0 %1830  ;;  %3183 = vpow2.f32 %v1846_v31 }
 0x31a   :  { %v3578_v23 = vpop.eup %3173  ;;  %3185 = vpow2.f32 %v1850_v21  ;;  %v936_v40 = vrot.slane %v928_v24, %v3395_v49  ;;  %v943_v41 = vrot.slane %v929_v25, %v3395_v49  ;;  %v1839_v16 = vsub.f32 %v3568_v6, %v3576_v22 }
 0x31b   :  { %v1868_v26 = vsel %vm1189_vm3, %v3578_v23, 0.0  ;;  %v3582_v27 = vpop.eup %3175 }
 0x31c   :  { %1869 = vadd.xlane.f32.xlu1 %v1868_v26  ;;  %v1856_v42 = vsel %vm1189_vm3, %v3582_v27, 0.0  ;;  %v1854_v17 = vmul.f32 1.442695, %v1839_v16 }
 0x31d   :  { %v901_v28 = vpop.permute.xlu0 %900 }
 0x31e   :  { %v3584_v30 = vpop.eup %3177  ;;  %v912_v33 = vcombine.low %v3397_v52, %v901_v28  ;;  %v913_v34 = vcombine.high %v3397_v52, %v901_v28  ;;  %3187 = vpow2.f32 %v1854_v17 }
 0x31f   :  { %v1874_v43 = vsel %vm1189_vm3, %v3584_v30, 0.0  ;;  %v3594_v44 = vpop.eup %3179 }
 0x320   :  { %v920_v45 = vrot.slane %v912_v33, %v3395_v49  ;;  %v927_v46 = vrot.slane %v913_v34, %v3395_v49  ;;  %1857 = vadd.xlane.f32.xlu1 %v1856_v42  ;;  %1875 = vadd.xlane.f32.xlu0 %v1874_v43  ;;  %v1862_v58 = vsel %vm1189_vm3, %v3594_v44, 0.0 }
 0x322   :  { %v3598_v48 = vpop.eup %3181  ;;  %v944_v52 = vcombine.low %v920_v45, %v936_v40  ;;  %v945_v55 = vcombine.high %v920_v45, %v936_v40  ;;  %v960_v56 = vcombine.low %v927_v46, %v943_v41  ;;  %v961_v29 = vcombine.high %v927_v46, %v943_v41 }
 0x323   :  { %v1859_v59 = vsel %vm1189_vm3, %v3598_v48, 0.0  ;;  %v3604_v60 = vpop.eup %3183 }
 0x324   :  { %v952_v1 = vrot.slane %v944_v52, %v3401_v57  ;;  %v959_v61 = vrot.slane %v945_v55, %v3401_v57  ;;  %v968_v2 = vrot.slane %v960_v56, %v3401_v57  ;;  %v975_v62 = vrot.slane %v961_v29, %v3401_v57  ;;  %1863 = vadd.xlane.f32.xlu1 %v1862_v58  ;;  %v3610_v5 = vpop.eup %3185 }
 0x325   :  { %1860 = vadd.xlane.f32.xlu0 %v1859_v59  ;;  %v1865_v35 = vsel %vm1189_vm3, %v3604_v60, 0.0  ;;  %v1871_v54 = vsel %vm1189_vm3, %v3610_v5, 0.0 }
 0x326   :  { %v1048_v3 = vcombine.low %v952_v1, %v959_v61  ;;  %v2912_v63 = vcombine.high %v952_v1, %v959_v61  ;;  %v1064_v0 = vcombine.low %v968_v2, %v975_v62  ;;  %v2913_v4 = vcombine.high %v968_v2, %v975_v62 }
 0x328   :  { %v1055_v37 = vrot.slane %v1048_v3, %v3395_v49  ;;  %v1063_v38 = vrot.slane %v2912_v63, %v3395_v49  ;;  %v1071_v39 = vrot.slane %v1064_v0, %v3395_v49  ;;  %v1079_v7 = vrot.slane %v2913_v4, %v3395_v49  ;;  %v3632_v31 = vpop.eup %3187 }
 0x329   :  { %1866 = vadd.xlane.f32.xlu0 %v1865_v35  ;;  %v1877_v18 = vsel %vm1189_vm3, %v3632_v31, 0.0 }
 0x32a   :  { %v1080_v50 = vcombine.low %v1055_v37, %v1063_v38  ;;  %v1096_v51 = vcombine.low %v1071_v39, %v1079_v7  ;;  %v1081_v53 = vcombine.high %v1055_v37, %v1063_v38  ;;  %v1097_v36 = vcombine.high %v1071_v39, %v1079_v7 }
 0x32c   :  { %v1088_v8 = vrot.slane %v1080_v50, %v3401_v57  ;;  %v1104_v9 = vrot.slane %v1096_v51, %v3401_v57  ;;  %v1095_v10 = vrot.slane %v1081_v53, %v3401_v57  ;;  %v1111_v11 = vrot.slane %v1097_v36, %v3401_v57 }
 0x32d   :  { %1872 = vadd.xlane.f32.xlu0 %v1871_v54 }
 0x32e   :  { %v1112_v12 = vcombine.low %v1088_v8, %v1104_v9  ;;  %v1113_v13 = vcombine.high %v1088_v8, %v1104_v9  ;;  %v1114_v14 = vcombine.low %v1095_v10, %v1111_v11  ;;  %v1115_v15 = vcombine.high %v1095_v10, %v1111_v11 }
 0x330   :  { %3077 = vmatpush3.msra.mxu0 %v1112_v12  ;;  %3082 = vmatpush3.msra.mxu1 %v1113_v13 }
 0x331   :  { %3086 = vmatprep.subr.mxu0 %v3284_v32  ;;  %3091 = vmatprep.subr.mxu1 %v3284_v32 }
 0x335   :  { %902 = vrot.lane.b32.xlu1 %v3393_v47, %s3283_s15 }
 0x343   :  { %896 = vrot.lane.b32.xlu0 %v3393_v47, %s3282_s14 }
 0x359   :  { %1878 = vadd.xlane.f32.xlu1 %v1877_v18 }
 0x36a   :  { %908 = vrot.lane.b32.xlu1 %v3393_v47, %s3281_s13 }
 0x3a9   :  { %v1870_v19 = vpop.xlane.xlu1 %1869 }
 0x3ad   :  { %v1876_v20 = vpop.xlane.xlu0 %1875  ;;  %v1858_v21 = vpop.xlane.xlu1 %1857 }
 0x3ae   :  { %3189 = vrcp.f32 %v1858_v21 }
 0x3b1   :  { %v1864_v24 = vpop.xlane.xlu1 %1863 }
 0x3b2   :  { %v1861_v6 = vpop.xlane.xlu0 %1860  ;;  %3191 = vrcp.f32 %v1864_v24 }
 0x3b3   :  { %3193 = vrcp.f32 %v1861_v6 }
 0x3b5   :  { %v903_v42 = vpop.permute.xlu1 %902 }
 0x3b6   :  { %v1867_v22 = vpop.xlane.xlu0 %1866  ;;  %v980_v45 = vcombine.low %v3393_v47, %v903_v42  ;;  %v981_v46 = vcombine.high %v3393_v47, %v903_v42 }
 0x3b7   :  { %3195 = vrcp.f32 %v1867_v22 }
 0x3b8   :  { %v3190_v25 = vpop.eup %3189  ;;  %3197 = vrcp.f32 %v1870_v19  ;;  %v988_v29 = vrot.slane %v980_v45, %v3395_v49  ;;  %v995_v58 = vrot.slane %v981_v46, %v3395_v49 }
 0x3b9   :  { %v1888_v26 = vmul.f32 %v3190_v25, %v3582_v27 }
 0x3ba   :  { %v1873_v43 = vpop.xlane.xlu0 %1872 }
 0x3bb   :  { %3079 = vmatmul.mubr.msk.f32.vlgmr.msra.gmra.mrb[8].mxu0 %vm1189_vm3, %v1888_v26  ;;  %3199 = vrcp.f32 %v1873_v43 }
 0x3bc   :  { %v3192_v28 = vpop.eup %3191  ;;  %3087 = vmatpush3.msra.mxu0 %v1114_v14  ;;  %3088 = vmatprep.mubr.msk.f32.mxu0 %vm3285_vm1, %v3284_v32  ;;  %3201 = vrcp.f32 %v1876_v20 }
 0x3bd   :  { %v3194_v33 = vpop.eup %3193  ;;  %v1890_v34 = vmul.f32 %v3192_v28, %v3594_v44  ;;  %3096 = vmatprep.subr.mxu0 %v3284_v32 }
 0x3be   :  { %v1889_v40 = vmul.f32 %v3194_v33, %v3598_v48  ;;  %v897_v48 = vpop.permute.xlu0 %896 }
 0x3bf   :  { %3089 = vmatmul.mubr.msk.f32.vlgmr.msra.gmra.mrb[10].mxu0 %vm1189_vm3, %v1890_v34 }
 0x3c0   :  { %3084 = vmatmul.mubr.msk.f32.vlgmr.msra.gmra.mrb[14].mxu1 %vm1189_vm3, %v1889_v40  ;;  %3098 = vmatprep.mubr.msk.f32.mxu0 %vm3285_vm1, %v3284_v32 }
 0x3c1   :  { %v3196_v41 = vpop.eup %3195  ;;  %3092 = vmatpush3.msra.mxu1 %v1115_v15  ;;  %3093 = vmatprep.mubr.msk.f32.mxu1 %vm3285_vm1, %v3284_v32 }
 0x3c2   :  { %v1891_v27 = vmul.f32 %v3196_v41, %v3604_v60  ;;  %3101 = vmatprep.subr.mxu1 %v3284_v32  ;;  %v3198_v53 = vpop.eup %3197 }
 0x3c3   :  { %v1892_v19 = vmul.f32 %v3198_v53, %v3578_v23 }
 0x3c4   :  { %3094 = vmatmul.mubr.msk.f32.vlgmr.msra.gmra.mrb[16].mxu1 %vm1189_vm3, %v1891_v27 }
 0x3c5   :  { %3103 = vmatprep.mubr.msk.f32.mxu1 %vm3285_vm1, %v3284_v32  ;;  %v3200_v10 = vpop.eup %3199 }
 0x3c6   :  { %v3202_v13 = vpop.eup %3201  ;;  %v1893_v20 = vmul.f32 %v3200_v10, %v3610_v5 }
 0x3c7   :  { %v1894_v6 = vmul.f32 %v3202_v13, %v3584_v30 }
 0x3e6   :  { %v1879_v44 = vpop.xlane.xlu1 %1878 }
 0x3e7   :  { %3203 = vrcp.f32 %v1879_v44 }
 0x3ea   :  { %v909_v52 = vpop.permute.xlu1 %908 }
 0x3eb   :  { %v996_v55 = vcombine.low %v897_v48, %v909_v52  ;;  %v997_v56 = vcombine.high %v897_v48, %v909_v52 }
 0x3ed   :  { %v1004_v59 = vrot.slane %v996_v55, %v3395_v49  ;;  %v1011_v60 = vrot.slane %v997_v56, %v3395_v49 }
 0x3ef   :  { %v1012_v1 = vcombine.low %v988_v29, %v1004_v59  ;;  %v1013_v61 = vcombine.high %v988_v29, %v1004_v59  ;;  %v1028_v2 = vcombine.low %v995_v58, %v1011_v60  ;;  %v1029_v62 = vcombine.high %v995_v58, %v1011_v60 }
 0x3f1   :  { %v1020_v47 = vrot.slane %v1012_v1, %v3401_v57  ;;  %v1027_v3 = vrot.slane %v1013_v61, %v3401_v57  ;;  %v1036_v63 = vrot.slane %v1028_v2, %v3401_v57  ;;  %v1043_v0 = vrot.slane %v1029_v62, %v3401_v57  ;;  %v3204_v18 = vpop.eup %3203 }
 0x3f2   :  { %v1895_v22 = vmul.f32 %v3204_v18, %v3632_v31 }
 0x3f3   :  { %v1116_v4 = vcombine.low %v1020_v47, %v1027_v3  ;;  %v2914_v35 = vcombine.high %v1020_v47, %v1027_v3  ;;  %v1132_v37 = vcombine.low %v1036_v63, %v1043_v0  ;;  %v2915_v38 = vcombine.high %v1036_v63, %v1043_v0 }
 0x3f5   :  { %v1123_v39 = vrot.slane %v1116_v4, %v3395_v49  ;;  %v1131_v7 = vrot.slane %v2914_v35, %v3395_v49  ;;  %v1139_v50 = vrot.slane %v1132_v37, %v3395_v49  ;;  %v1147_v51 = vrot.slane %v2915_v38, %v3395_v49 }
 0x3f7   :  { %v1148_v36 = vcombine.low %v1123_v39, %v1131_v7  ;;  %v1164_v54 = vcombine.low %v1139_v50, %v1147_v51  ;;  %v1149_v8 = vcombine.high %v1123_v39, %v1131_v7  ;;  %v1165_v9 = vcombine.high %v1139_v50, %v1147_v51 }
 0x3f9   :  { %v1156_v11 = vrot.slane %v1148_v36, %v3401_v57  ;;  %v1172_v12 = vrot.slane %v1164_v54, %v3401_v57  ;;  %v1163_v14 = vrot.slane %v1149_v8, %v3401_v57  ;;  %v1179_v15 = vrot.slane %v1165_v9, %v3401_v57 }
 0x3fb   :  { %v1180_v16 = vcombine.low %v1156_v11, %v1172_v12  ;;  %v1181_v17 = vcombine.high %v1156_v11, %v1172_v12  ;;  %v1182_v21 = vcombine.low %v1163_v14, %v1179_v15  ;;  %v1183_v24 = vcombine.high %v1163_v14, %v1179_v15 }
 0x3fd   :  { %3097 = vmatpush3.msra.mxu0 %v1180_v16  ;;  %3102 = vmatpush3.msra.mxu1 %v1181_v17 }
 0x3fe   :  { %3099 = vmatmul.mubr.msk.f32.vlgmr.msra.gmra.mrb[12].mxu0 %vm1189_vm3, %v1892_v19  ;;  %3104 = vmatmul.mubr.msk.f32.vlgmr.msra.gmra.mrb[18].mxu1 %vm1189_vm3, %v1893_v20 }
 0x3ff   :  { %3106 = vmatprep.subr.mxu0 %v3284_v32  ;;  %3111 = vmatprep.subr.mxu1 %v3284_v32 }
 0x400   :  { %3107 = vmatpush3.msra.mxu0 %v1182_v21  ;;  %3112 = vmatpush3.msra.mxu1 %v1183_v24 }
 0x401   :  { %3108 = vmatprep.mubr.msk.f32.mxu0 %vm3285_vm1, %v3284_v32  ;;  %3113 = vmatprep.mubr.msk.f32.mxu1 %vm3285_vm1, %v3284_v32 }
 0x402   :  { %3109 = vmatmul.mubr.msk.f32.vlgmr.msra.gmra.mrb[14].mxu0 %vm1189_vm3, %v1894_v6  ;;  %3114 = vmatmul.mubr.msk.f32.vlgmr.msra.gmra.mrb[20].mxu1 %vm1189_vm3, %v1895_v22 }
 0x48e   :  { %v1965_v23 = vpop.f32.mrb[8].mxu0 }
 0x48f   :  { %v3080_v5 = vpop.f32.mrb[9].mxu0 }
 0x492   :  { %v2111_v26 = vpop.f32.mrb[10].mxu0 }
 0x493   :  { %v2038_v25 = vpop.f32.mrb[14].mxu1  ;;  %v2480_v28 = vcombine.low %v1965_v23, %v2111_v26  ;;  %v2481_v30 = vcombine.high %v1965_v23, %v2111_v26  ;;  %v3090_v31 = vpop.f32.mrb[11].mxu0  ;;  %v2786_v26 = vld [vmem:[#allocation5 + $0x68] sm:$0xff] }
 0x494   :  { %v3085_v33 = vpop.f32.mrb[15].mxu1 }
 0x495   :  { %v2488_v42 = vrot.slane %v2480_v28, %v3395_v49  ;;  %v2495_v32 = vrot.slane %v2481_v30, %v3395_v49 }
 0x497   :  { %v2184_v34 = vpop.f32.mrb[16].mxu1 }
 0x498   :  { %v2496_v40 = vcombine.low %v2038_v25, %v2184_v34  ;;  %v2497_v41 = vcombine.high %v2038_v25, %v2184_v34  ;;  %v3095_v27 = vpop.f32.mrb[17].mxu1  ;;  %v2785_v25 = vld [vmem:[#allocation5 + $0x60] sm:$0xff] }
 0x499   :  { %v3151_v34 = vpack.c.bf16 %v2786_v26, %v2785_v25 }
 0x49a   :  { %v2504_v43 = vrot.slane %v2496_v40, %v3395_v49  ;;  %v2511_v44 = vrot.slane %v2497_v41, %v3395_v49 }
 0x49b   :  { %3152 = vmatprep.subr.bf16.mxu0 %v3151_v34 }
 0x49c   :  { %v2512_v45 = vcombine.low %v2488_v42, %v2504_v43  ;;  %v2513_v46 = vcombine.high %v2488_v42, %v2504_v43  ;;  %v2528_v48 = vcombine.low %v2495_v32, %v2511_v44  ;;  %v2529_v52 = vcombine.high %v2495_v32, %v2511_v44  ;;  %v2787_v32 = vld [vmem:[#allocation5 + $0x70] sm:$0xff]  ;;  %v2788_v43 = vld [vmem:[#allocation5 + $0x78] sm:$0xff]  ;;  %3154 = vmatpush3.bf16.msra.mxu0 %v3151_v34 }
 0x49e   :  { %v2520_v55 = vrot.slane %v2512_v45, %v3401_v57  ;;  %v2527_v56 = vrot.slane %v2513_v46, %v3401_v57  ;;  %v2536_v29 = vrot.slane %v2528_v48, %v3401_v57  ;;  %v2543_v58 = vrot.slane %v2529_v52, %v3401_v57 }
 0x49f   :  { %v3155_v52 = vpack.c.bf16 %v2788_v43, %v2787_v32 }
 0x4a0   :  { %v2616_v59 = vcombine.low %v2520_v55, %v2527_v56  ;;  %v2940_v60 = vcombine.high %v2520_v55, %v2527_v56  ;;  %v2632_v1 = vcombine.low %v2536_v29, %v2543_v58  ;;  %v2941_v61 = vcombine.high %v2536_v29, %v2543_v58 }
 0x4a1   :  { %3156 = vmatprep.subr.bf16.mxu0 %v3155_v52 }
 0x4a2   :  { %v2623_v2 = vrot.slane %v2616_v59, %v3395_v49  ;;  %v2631_v62 = vrot.slane %v2940_v60, %v3395_v49  ;;  %v2639_v47 = vrot.slane %v2632_v1, %v3395_v49  ;;  %v2647_v3 = vrot.slane %v2941_v61, %v3395_v49  ;;  %3158 = vmatpush3.bf16.msra.mxu0 %v3155_v52 }
 0x4a4   :  { %v2648_v63 = vcombine.low %v2623_v2, %v2631_v62  ;;  %v2664_v0 = vcombine.low %v2639_v47, %v2647_v3  ;;  %v2649_v4 = vcombine.high %v2623_v2, %v2631_v62  ;;  %v2665_v35 = vcombine.high %v2639_v47, %v2647_v3 }
 0x4a6   :  { %v3701_v37 = vrot.slane %v2648_v63, %v3401_v57  ;;  %v3704_v38 = vrot.slane %v2664_v0, %v3401_v57  ;;  %v2663_v39 = vrot.slane %v2649_v4, %v3401_v57  ;;  %v2679_v7 = vrot.slane %v2665_v35, %v3401_v57 }
 0x4a8   :  { %v2681_v50 = vcombine.high %v3701_v37, %v3704_v38  ;;  %v2680_v51 = vcombine.low %v3701_v37, %v3704_v38  ;;  %v2682_v53 = vcombine.low %v2663_v39, %v2679_v7  ;;  %v2683_v36 = vcombine.high %v2663_v39, %v2679_v7  ;;  %v2944_v37 = vld [vmem:[%s3763_s2 + $0x3] ss:$0 sm:$0xff] }
 0x4aa   :  { %2754 = vrot.lane.b32.xlu0 %v2681_v50, %s3279_s23 }
 0x4ae   :  { %2762 = vrot.lane.b32.xlu0 %v2682_v53, %s3288_s18 }
 0x4b2   :  { %2770 = vrot.lane.b32.xlu0 %v2683_v36, %s3289_s19 }
 0x4d1   :  { %v2257_v54 = vpop.f32.mrb[12].mxu0  ;;  %v2330_v8 = vpop.f32.mrb[18].mxu1 }
 0x4d2   :  { %v3100_v9 = vpop.f32.mrb[13].mxu0  ;;  %v3105_v10 = vpop.f32.mrb[19].mxu1 }
 0x4d5   :  { %v2403_v11 = vpop.f32.mrb[14].mxu0  ;;  %v2476_v12 = vpop.f32.mrb[20].mxu1 }
 0x4d6   :  { %v2548_v13 = vcombine.low %v2257_v54, %v2403_v11  ;;  %v2549_v14 = vcombine.high %v2257_v54, %v2403_v11  ;;  %v2564_v15 = vcombine.low %v2330_v8, %v2476_v12  ;;  %v2565_v16 = vcombine.high %v2330_v8, %v2476_v12  ;;  %v3110_v17 = vpop.f32.mrb[15].mxu0  ;;  %v3115_v18 = vpop.f32.mrb[21].mxu1 }
 0x4d8   :  { %v2556_v19 = vrot.slane %v2548_v13, %v3395_v49  ;;  %v2563_v20 = vrot.slane %v2549_v14, %v3395_v49  ;;  %v2572_v21 = vrot.slane %v2564_v15, %v3395_v49  ;;  %v2579_v24 = vrot.slane %v2565_v16, %v3395_v49 }
 0x4da   :  { %v2580_v6 = vcombine.low %v2556_v19, %v2572_v21  ;;  %v2581_v22 = vcombine.high %v2556_v19, %v2572_v21  ;;  %v2596_v23 = vcombine.low %v2563_v20, %v2579_v24  ;;  %v2597_v5 = vcombine.high %v2563_v20, %v2579_v24 }
 0x4dc   :  { %v2588_v28 = vrot.slane %v2580_v6, %v3401_v57  ;;  %v2595_v30 = vrot.slane %v2581_v22, %v3401_v57  ;;  %v2604_v33 = vrot.slane %v2596_v23, %v3401_v57  ;;  %v2611_v31 = vrot.slane %v2597_v5, %v3401_v57 }
 0x4de   :  { %v2684_v40 = vcombine.low %v2588_v28, %v2595_v30  ;;  %v2942_v41 = vcombine.high %v2588_v28, %v2595_v30  ;;  %v2700_v27 = vcombine.low %v2604_v33, %v2611_v31  ;;  %v2943_v42 = vcombine.high %v2604_v33, %v2611_v31 }
 0x4e0   :  { %v2691_v44 = vrot.slane %v2684_v40, %v3395_v49  ;;  %v2699_v45 = vrot.slane %v2942_v41, %v3395_v49  ;;  %v2707_v46 = vrot.slane %v2700_v27, %v3395_v49  ;;  %v2715_v48 = vrot.slane %v2943_v42, %v3395_v49 }
 0x4e2   :  { %v2716_v55 = vcombine.low %v2691_v44, %v2699_v45  ;;  %v2732_v56 = vcombine.low %v2707_v46, %v2715_v48  ;;  %v2717_v29 = vcombine.high %v2691_v44, %v2699_v45  ;;  %v2733_v58 = vcombine.high %v2707_v46, %v2715_v48 }
 0x4e4   :  { %v2724_v59 = vrot.slane %v2716_v55, %v3401_v57  ;;  %v2740_v60 = vrot.slane %v2732_v56, %v3401_v57  ;;  %v2731_v1 = vrot.slane %v2717_v29, %v3401_v57  ;;  %v2747_v61 = vrot.slane %v2733_v58, %v3401_v57 }
 0x4e6   :  { %v2749_v2 = vcombine.high %v2724_v59, %v2740_v60  ;;  %v2748_v62 = vcombine.low %v2724_v59, %v2740_v60  ;;  %v2750_v47 = vcombine.low %v2731_v1, %v2747_v61  ;;  %v2751_v49 = vcombine.high %v2731_v1, %v2747_v61 }
 0x4e8   :  { %2756 = vrot.lane.b32.xlu1 %v2749_v2, %s3279_s23 }
 0x4ec   :  { %2764 = vrot.lane.b32.xlu1 %v2750_v47, %s3288_s18 }
 0x4f0   :  { %2772 = vrot.lane.b32.xlu1 %v2751_v49, %s3289_s19 }
 0x51c   :  { %v2755_v3 = vpop.permute.xlu0 %2754 }
 0x51d   :  { %v2776_v57 = vsel %vm1189_vm3, %v2680_v51, %v2755_v3 }
 0x520   :  { %v2763_v63 = vpop.permute.xlu0 %2762 }
 0x521   :  { %v2779_v0 = vsel %vm2778_vm4, %v2776_v57, %v2763_v63 }
 0x524   :  { %v2771_v4 = vpop.permute.xlu0 %2770 }
 0x525   :  { %v2782_v35 = vsel %vm2781_vm5, %v2779_v0, %v2771_v4 }
 0x526   :  { %3124 = vmatprep.mubr.msk.f32.mxu0 %vm54_vm0, %v2782_v35 }
 0x55a   :  { %v2757_v39 = vpop.permute.xlu1 %2756 }
 0x55b   :  { %v2777_v50 = vsel %vm1189_vm3, %v2748_v62, %v2757_v39 }
 0x55e   :  { %v2765_v7 = vpop.permute.xlu1 %2764 }
 0x55f   :  { %v2780_v53 = vsel %vm2778_vm4, %v2777_v50, %v2765_v7 }
 0x562   :  { %v2773_v36 = vpop.permute.xlu1 %2772 }
 0x563   :  { %v2783_v54 = vsel %vm2781_vm5, %v2780_v53, %v2773_v36 }
 0x564   :  { %3125 = vmatmul.mubr.msk.f32.vlgmr.msra.gmra.mrb[16].mxu0 %vm54_vm0, %v2783_v54 }
 0x637   :  { %v3126_v38 = vpop.f32.mrb[16].mxu0 }
 0x638   :  { %v2872_v51 = vadd.f32 %v3126_v38, %v2944_v37  ;;  %v2866_v8 = vpop.f32.mrb[17].mxu0 }
 0x639   :  { %v2867_v9 = vadd.f32 %v2944_v37, %v2866_v8 }
 0x63a   :  { %2876 = vst.msk [vmem:[#allocation7 + $0x8] sm:$0xff] %vm54_vm0, %v2872_v51 }
 0x63b   :  { %2875 = vst.msk [vmem:[#allocation7] sm:$0xff] %vm54_vm0, %v2867_v9 }
 0x63c   :  { %3260 = shalt.err (!%p3257_p6)
}
 0x63d   :  { %s3261_s28 = scalar_lea.hbm %s3764_s3, 256 }
 0x63e   :  { %p3262_p7 = scmp.ne.s32.totalorder %s3764_s3, %s3261_s28  ;;  %p3265_p8 = scmp.lt.u32.totalorder %s3261_s28, %s3764_s3 }
 0x640   :  { %p3267_p9 = pnand %p3265_p8, %p3262_p7 }
 0x642   :  { %3270 = shalt.err (!%p3267_p9)
}
 0x643   :  { %2888 = dma.vmem_to_hbm [thread:$0]  %s2883_s25, 256, %s3764_s3, [#allocation4], %s3278_s22, %s3278_s22, %s3279_s23  }
 0x644   :  { %3275 = dma.done.wait [#allocation4], 256  }
 0x645   :  { %3276 = vsyncadd [#allocation4], 4294967040 }
 0x646   :  { %2892 = vsyncpa [#allocation3], 1 }
 0x647   :  { %2893 = vsyncpa [#allocation6], 1 }
 0x648   :  { %2894 = vsyncpa [#allocation4], 1 }

</bundles_post_ra>
